<compile_context>
chip_gen: v6e
topology: v6e:2x2x1
jax: 0.10.0
libtpu: 0.0.40
codegen_flags: <defaults>
</compile_context>

<pallas_src>
import jax
import jax.numpy as jnp
from jax.experimental import pallas as pl
from jax.experimental.pallas import tpu as pltpu


def gateconv_kernel(p_ref, wx_ref, wy_ref, bx_ref, by_ref, o_ref):
    """One row tile: p (Kdim, tm) bf16; wx/wy (OC/2, Kdim) bf16; bx/by (OC/2, 1) f32."""
    p = p_ref[...]                                                   # (Kdim, tm) bf16
    # Two small MXU GEMMs with f32 accumulation, one per gate half.
    x = jnp.dot(wx_ref[...], p, preferred_element_type=jnp.float32) + bx_ref[...]
    y = jnp.dot(wy_ref[...], p, preferred_element_type=jnp.float32) + by_ref[...]
    x = jnp.where(x >= 0.0, x, 0.2 * x)        # LeakyReLU(0.2), f32 on the VPU
    y = jax.nn.sigmoid(y)                      # sigmoid (exp on the EUP), f32
    o_ref[...] = (x * y).astype(o_ref.dtype)   # lane-dense (OC/2, tm) store


def _im2col_kxm(x, kernel_size, stride, padding, dilation):
    """Extract conv patches in GEMM-transposed layout.

    Returns (C*KH*KW, N*OH*OW), OH, OW.
    K ordering is (C, KH, KW) to match weight.reshape(OC, C*KH*KW);
    M ordering is (N, OH, OW).
    """
    N, C, H, W = x.shape
    K = kernel_size
    xp = jnp.pad(x, ((0, 0), (0, 0), (padding, padding), (padding, padding)))
    eff_k = dilation * (K - 1) + 1
    OH = (H + 2 * padding - eff_k) // stride + 1
    OW = (W + 2 * padding - eff_k) // stride + 1
    cols = []
    for kh in range(K):
        for kw in range(K):
            h0 = kh * dilation
            w0 = kw * dilation
            cols.append(
                xp[:, :, h0:h0 + stride * OH:stride, w0:w0 + stride * OW:stride]
            )  # (N, C, OH, OW)
    patches = jnp.stack(cols, axis=0).reshape(K, K, N, C, OH, OW)
    patches = patches.transpose(3, 0, 1, 2, 4, 5)            # (C, KH, KW, N, OH, OW)
    return patches.reshape(C * K * K, N * OH * OW), OH, OW


def _pick_row_tile(m, kdim, half, *, vmem_budget_bytes=24 * 1024 * 1024, min_grid=4):
    """Largest power-of-two row tile (multiple of 128) such that the
    double-buffered VMEM footprint fits the budget and the grid keeps at least
    `min_grid` steps (pipelining; megacore balance on v7x)."""
    def tile_bytes(tm):
        # 2x double-buffered bf16 patch block + 2x double-buffered f32 out block
        return 2 * (kdim * tm * 2) + 2 * (half * tm * 4)

    tm = 2048
    while tm > 128 and (tile_bytes(tm) > vmem_budget_bytes or pl.cdiv(m, tm) < min_grid):
        tm //= 2
    return tm


def gate_conv_forward(x_nchw, weight, bias, *, kernel_size, stride=1, padding=0,
                      dilation=1):
    """GateConv forward. x_nchw: (N, C, H, W); weight: (OC, C, KH, KW); bias: (OC,).

    Returns (N, OC//2, OH, OW), matching the PyTorch module output layout.
    """
    N, C, H, W = x_nchw.shape
    OC = weight.shape[0]
    assert OC % 2 == 0, "out_channels must be even for gating"
    half = OC // 2

    patches, OH, OW = _im2col_kxm(x_nchw, kernel_size, stride, padding, dilation)
    Kdim, M = patches.shape

    # Row tiling: pad M up to a multiple of the chosen lane-dense tile.
    tm = _pick_row_tile(M, Kdim, half)
    M_pad = pl.cdiv(M, tm) * tm
    if M_pad != M:
        patches = jnp.pad(patches, ((0, 0), (0, M_pad - M)))

    # Streamed / resident operands in bf16; bias stays f32 (added post-accum).
    patches_bf16 = patches.astype(jnp.bfloat16)                 # (Kdim, M_pad)
    w_mat = weight.reshape(OC, Kdim).astype(jnp.bfloat16)       # (OC, Kdim)
    wx, wy = w_mat[:half], w_mat[half:]                         # (OC/2, Kdim) each
    bx = bias[:half].reshape(half, 1).astype(jnp.float32)
    by = bias[half:].reshape(half, 1).astype(jnp.float32)

    grid = (M_pad // tm,)

    cost = pl.CostEstimate(
        flops=2 * M_pad * Kdim * OC,
        transcendentals=M_pad * half,                           # sigmoid exp
        bytes_accessed=(patches_bf16.size * 2 + w_mat.size * 2
                        + OC * 4 + M_pad * half * x_nchw.dtype.itemsize),
    )

    out_flat = pl.pallas_call(
        gateconv_kernel,
        out_shape=jax.ShapeDtypeStruct((half, M_pad), x_nchw.dtype),
        grid_spec=pltpu.PrefetchScalarGridSpec(
            num_scalar_prefetch=0,
            grid=grid,
            in_specs=[
                pl.BlockSpec((Kdim, tm), lambda i: (0, i)),     # patches tile (streamed)
                pl.BlockSpec((half, Kdim), lambda i: (0, 0)),   # wx (resident)
                pl.BlockSpec((half, Kdim), lambda i: (0, 0)),   # wy (resident)
                pl.BlockSpec((half, 1), lambda i: (0, 0)),      # bx (resident)
                pl.BlockSpec((half, 1), lambda i: (0, 0)),      # by (resident)
            ],
            out_specs=pl.BlockSpec((half, tm), lambda i: (0, i)),
        ),
        compiler_params=pltpu.CompilerParams(
            dimension_semantics=("parallel",),
            vmem_limit_bytes=32 * 1024 * 1024,
        ),
        cost_estimate=cost,
    )(patches_bf16, wx, wy, bx, by)

    out = out_flat[:, :M].reshape(half, N, OH, OW)              # channel-major already
    return out.transpose(1, 0, 2, 3)                            # -> NCHW


def _reference_forward_mixed(x_nchw, weight, bias, *, kernel_size, stride, padding,
                             dilation):
    """Pure-JAX reference with the same mixed precision (bf16 MXU, f32 accum/gating)."""
    out = jax.lax.conv_general_dilated(
        x_nchw.astype(jnp.bfloat16), weight.astype(jnp.bfloat16),
        window_strides=(stride, stride),
        padding=[(padding, padding), (padding, padding)],
        rhs_dilation=(dilation, dilation),
        dimension_numbers=("NCHW", "OIHW", "NCHW"),
        preferred_element_type=jnp.float32,
    ) + bias.reshape(1, -1, 1, 1).astype(jnp.float32)
    oc = out.shape[1]
    xh, yh = out[:, :oc // 2], out[:, oc // 2:]
    xh = jnp.where(xh >= 0, xh, 0.2 * xh)
    yh = jax.nn.sigmoid(yh)
    return (xh * yh).astype(x_nchw.dtype)


def _reference_forward_f32(x_nchw, weight, bias, *, kernel_size, stride, padding,
                           dilation):
    """Full-f32 reference (exact module semantics) for a loose sanity check."""
    out = jax.lax.conv_general_dilated(
        x_nchw, weight,
        window_strides=(stride, stride),
        padding=[(padding, padding), (padding, padding)],
        rhs_dilation=(dilation, dilation),
        dimension_numbers=("NCHW", "OIHW", "NCHW"),
    ) + bias.reshape(1, -1, 1, 1)
    oc = out.shape[1]
    xh, yh = out[:, :oc // 2], out[:, oc // 2:]
    xh = jnp.where(xh >= 0, xh, 0.2 * xh)
    yh = jax.nn.sigmoid(yh)
    return xh * yh


if __name__ == "__main__":
    # Module config (synthetic, deterministic init)
    in_channels, out_channels = 4, 8
    kernel_size, stride, padding, dilation = 3, 1, 1, 1

    key = jax.random.PRNGKey(0)
    kx, kw, kb = jax.random.split(key, 3)

    N, H, W = 2, 16, 16
    x = jax.random.normal(kx, (N, in_channels, H, W), dtype=jnp.float32)

    # Kaiming-normal-like init for the conv weight (fan_in mode, gain=sqrt(2)).
    fan_in = in_channels * kernel_size * kernel_size
    w_std = (2.0 / fan_in) ** 0.5
    weight = w_std * jax.random.normal(
        kw, (out_channels, in_channels, kernel_size, kernel_size), dtype=jnp.float32)
    # Conv2d default bias init: U(-1/sqrt(fan_in), 1/sqrt(fan_in))
    b_bound = 1.0 / (fan_in ** 0.5)
    bias = jax.random.uniform(kb, (out_channels,), dtype=jnp.float32,
                              minval=-b_bound, maxval=b_bound)

    out = gate_conv_forward(x, weight, bias, kernel_size=kernel_size,
                            stride=stride, padding=padding, dilation=dilation)
    out = jax.block_until_ready(out)

    ref = _reference_forward_mixed(x, weight, bias, kernel_size=kernel_size,
                                   stride=stride, padding=padding, dilation=dilation)
    ref = jax.block_until_ready(ref)
    ref_f32 = _reference_forward_f32(x, weight, bias, kernel_size=kernel_size,
                                     stride=stride, padding=padding, dilation=dilation)
    ref_f32 = jax.block_until_ready(ref_f32)

    assert out.shape == (N, out_channels // 2, H, W), out.shape
    # Tight check against the same mixed-precision math.
    assert jnp.allclose(out, ref, atol=2e-3, rtol=2e-3), float(
        jnp.max(jnp.abs(out - ref)))
    # Loose check against exact f32 module semantics (bf16 quantization noise only).
    assert jnp.allclose(out, ref_f32, atol=5e-2, rtol=5e-2), float(
        jnp.max(jnp.abs(out - ref_f32)))

    print("KERNEL_OK")
</pallas_src>

<mosaic_0001>
module attributes {stable_mosaic.version = 11 : i64} {
  func.func @gateconv_kernel(%arg0: i32, %arg1: memref<36x128xbf16, #tpu.memory_space<vmem>>, %arg2: memref<4x36xbf16, #tpu.memory_space<vmem>>, %arg3: memref<4x36xbf16, #tpu.memory_space<vmem>>, %arg4: memref<4x1xf32, #tpu.memory_space<vmem>>, %arg5: memref<4x1xf32, #tpu.memory_space<vmem>>, %arg6: memref<4x128xf32, #tpu.memory_space<vmem>>) attributes {dimension_semantics = [#tpu.dimension_semantics<parallel>], iteration_bounds = array<i64: 4>, scalar_prefetch = 0 : i64, scratch_operands = 0 : i64, tpu.core_type = #tpu.core_type<tc>, window_params = [{transform_indices = @transform_0, window_bounds = array<i64: 36, 128>}, {pipeline_mode = #tpu.pipeline_mode<synchronous>, transform_indices = @transform_1, window_bounds = array<i64: 4, 36>}, {pipeline_mode = #tpu.pipeline_mode<synchronous>, transform_indices = @transform_2, window_bounds = array<i64: 4, 36>}, {pipeline_mode = #tpu.pipeline_mode<synchronous>, transform_indices = @transform_3, window_bounds = array<i64: 4, 1>}, {pipeline_mode = #tpu.pipeline_mode<synchronous>, transform_indices = @transform_4, window_bounds = array<i64: 4, 1>}, {transform_indices = @transform_5, window_bounds = array<i64: 4, 128>}]} {
    %c0 = arith.constant 0 : index
    %c0_0 = arith.constant 0 : index
    %0 = vector.load %arg1[%c0, %c0_0] : memref<36x128xbf16, #tpu.memory_space<vmem>>, vector<36x128xbf16>
    %c0_1 = arith.constant 0 : index
    %c0_2 = arith.constant 0 : index
    %1 = vector.load %arg2[%c0_1, %c0_2] : memref<4x36xbf16, #tpu.memory_space<vmem>>, vector<4x36xbf16>
    %cst = arith.constant dense<0.000000e+00> : vector<4x128xf32>
    %2 = tpu.matmul %1, %0, %cst {dimension_numbers = #tpu.dot_dimension_numbers<[1], [0], [0], [1], [0, 0, 1, 1], [], []>} : vector<4x36xbf16>, vector<36x128xbf16>, vector<4x128xf32> -> vector<4x128xf32>
    %c0_3 = arith.constant 0 : index
    %c0_4 = arith.constant 0 : index
    %3 = vector.load %arg4[%c0_3, %c0_4] : memref<4x1xf32, #tpu.memory_space<vmem>>, vector<4x1xf32>
    %4 = vector.broadcast %3 : vector<4x1xf32> to vector<4x128xf32>
    %5 = arith.addf %2, %4 : vector<4x128xf32>
    %c0_5 = arith.constant 0 : index
    %c0_6 = arith.constant 0 : index
    %6 = vector.load %arg3[%c0_5, %c0_6] : memref<4x36xbf16, #tpu.memory_space<vmem>>, vector<4x36xbf16>
    %cst_7 = arith.constant dense<0.000000e+00> : vector<4x128xf32>
    %7 = tpu.matmul %6, %0, %cst_7 {dimension_numbers = #tpu.dot_dimension_numbers<[1], [0], [0], [1], [0, 0, 1, 1], [], []>} : vector<4x36xbf16>, vector<36x128xbf16>, vector<4x128xf32> -> vector<4x128xf32>
    %c0_8 = arith.constant 0 : index
    %c0_9 = arith.constant 0 : index
    %8 = vector.load %arg5[%c0_8, %c0_9] : memref<4x1xf32, #tpu.memory_space<vmem>>, vector<4x1xf32>
    %9 = vector.broadcast %8 : vector<4x1xf32> to vector<4x128xf32>
    %10 = arith.addf %7, %9 : vector<4x128xf32>
    %cst_10 = arith.constant 0.000000e+00 : f32
    %11 = vector.broadcast %cst_10 : f32 to vector<4x128xf32>
    %12 = arith.cmpf oge, %5, %11 : vector<4x128xf32>
    %cst_11 = arith.constant 2.000000e-01 : f32
    %13 = vector.broadcast %cst_11 : f32 to vector<4x128xf32>
    %14 = arith.mulf %13, %5 : vector<4x128xf32>
    %15 = arith.select %12, %5, %14 : vector<4x128xi1>, vector<4x128xf32>
    %16 = arith.negf %10 : vector<4x128xf32>
    %17 = math.exp %16 : vector<4x128xf32>
    %cst_12 = arith.constant 1.000000e+00 : f32
    %18 = vector.broadcast %cst_12 : f32 to vector<4x128xf32>
    %19 = arith.addf %18, %17 : vector<4x128xf32>
    %20 = arith.divf %18, %19 : vector<4x128xf32>
    %21 = arith.mulf %15, %20 : vector<4x128xf32>
    %c0_13 = arith.constant 0 : index
    %c0_14 = arith.constant 0 : index
    %22 = vector.load %arg6[%c0_13, %c0_14] : memref<4x128xf32, #tpu.memory_space<vmem>>, vector<4x128xf32>
    tpu.vector_store %arg6[%c0_13, %c0_14], %21 {strides = array<i32>} : memref<4x128xf32, #tpu.memory_space<vmem>>, vector<4x128xf32>,
    return
  }
  func.func @transform_0(%arg0: i32) -> (i32, i32) {
    %c0_i32 = arith.constant 0 : i32
    %c0_i32_0 = arith.constant 0 : i32
    return %c0_i32, %arg0 : i32, i32
  }
  func.func @transform_1(%arg0: i32) -> (i32, i32) {
    %c0_i32 = arith.constant 0 : i32
    %c0_i32_0 = arith.constant 0 : i32
    %c0_i32_1 = arith.constant 0 : i32
    return %c0_i32, %c0_i32_0 : i32, i32
  }
  func.func @transform_2(%arg0: i32) -> (i32, i32) {
    %c0_i32 = arith.constant 0 : i32
    %c0_i32_0 = arith.constant 0 : i32
    %c0_i32_1 = arith.constant 0 : i32
    return %c0_i32, %c0_i32_0 : i32, i32
  }
  func.func @transform_3(%arg0: i32) -> (i32, i32) {
    %c0_i32 = arith.constant 0 : i32
    %c0_i32_0 = arith.constant 0 : i32
    %c0_i32_1 = arith.constant 0 : i32
    return %c0_i32, %c0_i32_0 : i32, i32
  }
  func.func @transform_4(%arg0: i32) -> (i32, i32) {
    %c0_i32 = arith.constant 0 : i32
    %c0_i32_0 = arith.constant 0 : i32
    %c0_i32_1 = arith.constant 0 : i32
    return %c0_i32, %c0_i32_0 : i32, i32
  }
  func.func @transform_5(%arg0: i32) -> (i32, i32) {
    %c0_i32 = arith.constant 0 : i32
    %c0_i32_0 = arith.constant 0 : i32
    return %c0_i32, %arg0 : i32, i32
  }
}

</mosaic_0001>

<bundles_post_ra>
// kernel: tpu_custom_call.1
= control target key start
LH: loop header
LB: loop body
LE: loop exit
PB: predicated region body
PF: predicated region fallthrough
CT: control target
= control target key end

     0   :  { %10 = vsyncpa [#allocation3], 0  ;;  %s848_s0 = inlined_call_operand.hbm [shape: bf16[36,512], index: 0, kind: input, shape index: {}]   ;;  %s849_s1 = inlined_call_operand.vmem [shape: bf16[4,36], index: 1, kind: input, shape index: {}]   ;;  %s850_s2 = inlined_call_operand.vmem [shape: bf16[4,36], index: 2, kind: input, shape index: {}]   ;;  %s851_s3 = inlined_call_operand.vmem [shape: f32[4,1], index: 3, kind: input, shape index: {}]   ;;  %s852_s4 = inlined_call_operand.vmem [shape: f32[4,1], index: 4, kind: input, shape index: {}]   ;;  %s853_s5 = inlined_call_operand.hbm [shape: f32[4,512], index: 5, kind: output, shape index: {}]  }
   0x1   :  { %12 = vsyncpa [#allocation3 + $0x1], 0 }
   0x2   :  { %13 = vsyncpa [#allocation4], 0 }
   0x3   :  { %15 = vsyncpa [#allocation4 + $0x1], 0  ;;  %s701_s18 = smov 0   ;;  %s703_s19 = smov 0  }
   0x4   :  { %s705_s20 = smov 0   ;;  %s707_s21 = smov 0  }
   0x5 LB: > { %s722_s22 = sadd.s32 4294967295, %s661_s21   ;;  %s463_s23 = sadd.s32 4294967294, %s661_s21   ;;  %s661_s21 = sphi %s707_s21, %s867_s21   ;;  %s657_s20 = sphi %s705_s20, %s866_s20   ;;  %s653_s19 = sphi %s703_s19, %s865_s19   ;;  %s649_s18 = sphi %s701_s18, %s864_s18  }
   0x6   : > { %s726_s24 = sadd.s32 1, %s661_s21   ;;  %s28_s25 = sadd.s32 1, %s657_s20 }
   0x7   : > { %s25_s26 = ssub.s32 %s661_s21, %s726_s24  ;;  %p35_p0 = scmp.ne.s32.totalorder %s657_s20, %s653_s19 }
   0x8   : > { %p26_p1 = scmp.eq.s32.totalorder %s25_s26, 0  ;;  %p36_p2 = scmp.eq.s32.totalorder %s661_s21, 0 }
   0x9   : > { %p41_p3 = scmp.ne.s32.totalorder %s653_s19, %s649_s18  ;;  %p42_p4 = scmp.eq.s32.totalorder %s722_s22, 0 }
   0xa   : > { %s738_s27 = scalar_select %p26_p1, %s657_s20, %s28_s25  }
   0xb   : > { %p37_p5 = por %p36_p2, %p35_p0  ;;  %p740_p6 = por %p42_p4, %p41_p3 }
   0xc   : > { %p149_p7 = scmp.eq.s32.totalorder %s722_s22, 3  ;;  %p155_p8 = scmp.eq.s32.totalorder %s463_s23, 3 }
   0xd   : > { %s856_s28 = scalar_select %p740_p6, 1, 0 }
   0xe   : > { %p521_p9 = scmp.lt.s32.totalorder %s661_s21, 4  ;;  %p746_p10 = por %p149_p7, %p35_p0 }
   0xf   : > { %p750_p11 = por %p155_p8, %p41_p3  ;;  %s187_s6 = sand.u32 1, %s657_s20  }
  0x10   : > { %s857_s29 = scalar_select %p746_p10, 1, 0 }
  0x11   : > { %s858_s30 = scalar_select %p750_p11, 1, 0 }
  0x12   : > { %s466_s7 = sshll.u32 %s661_s21, 6  ;;  %s507_s8 = smul.u32 20, %s187_s6 }
  0x13   : > { %s759_s11 = scalar_lea.hbm %s848_s0, %s466_s7  ;;  %p761_p12 = pnand %p521_p9, %p37_p5 }
  0x14   : > { %s191_s13 = scalar_lea.vmem [#allocation2], %s507_s8  ;;  %s768_s15 = scalar_lea.sflag [#allocation3], %s187_s6 }
  0x15   : > { %s197_s14 = sshll.u32 %s191_s13, 4  ;;  %s569_s16 = scalar_lea.hbm %s759_s11, 320  ;;  %s765_s14 = int_to_ptr.vmem [resolvable:$true] %s197_s14 }
  0x16   : > { %p570_p0 = scmp.ne.s32.totalorder %s759_s11, %s569_s16  ;;  %p571_p1 = pneg %p761_p12 }
  0x17   : > { %s574_s25 = scalar_lea.hbm %s848_s0, 1280  ;;  %p575_p4 = scmp.lt.s32.totalorder %s759_s11, %s848_s0 }
  0x18   : > { %p572_p2 = pnand %p571_p1, %p570_p0  ;;  %p576_p5 = scmp.lt.s32.totalorder %s574_s25, %s569_s16 }
  0x1a   : > { %p573_p3 = pneg %p572_p2  ;;  %p577_p7 = por %p576_p5, %p575_p4 }
  0x1c   : > { %p578_p8 = pnand %p577_p7, %p573_p3 }
  0x1e   : > { %581 = shalt.err (!%p578_p8)
}
  0x1f   : > { %s582_s6 = scalar_lea.vmem %s765_s14, 320  ;;  %s663_s8 = smov [#allocation2]  }
  0x20   : > { %p583_p9 = scmp.ne.s32.totalorder %s765_s14, %s582_s6  ;;  %s587_s9 = sshll.u32 %s663_s8, 4  ;;  %s588_s9 = int_to_ptr.vmem [resolvable:$false] %s587_s9 }
  0x21   : > { %s589_s10 = scalar_lea.vmem %s588_s9, 640  ;;  %p590_p2 = scmp.lt.s32.totalorder %s765_s14, %s588_s9 }
  0x22   : > { %p585_p13 = pnand %p583_p9, %p571_p1  ;;  %p591_p11 = scmp.lt.s32.totalorder %s589_s10, %s582_s6 }
  0x24   : > { %p586_p0 = pneg %p585_p13  ;;  %p592_p10 = por %p591_p11, %p590_p2 }
  0x26   : > { %p593_p6 = pnand %p592_p10, %p586_p0 }
  0x28   : > { %596 = shalt.err (!%p593_p6)
}
  0x29   : > { %s664_s13 = smov 256   ;;  %s665_s16 = smov 64  }
  0x2a   : > { %s666_s17 = smov 4   ;;  %p205_p13 = scmp.lt.s32.totalorder %s661_s21, 5 }
  0x2b   : > { %516 = dma.hbm_to_vmem [thread:$0]  (!%p761_p12), %s759_s11, 320, %s765_s14, %s768_s15, %s664_s13, %s665_s16, %s666_s17  }
  0x2c   : > { %p860_p1 = scmp.ge.s32.totalorder %s661_s21, 1 }
  0x2e   : > { %p206_p3 = pnand %p860_p1, %p205_p13 }
  0x2f   : > { %s793_s23 = sand.u32 (!%p206_p3), 1, %s653_s19   ;;  %p861_p6 = scmp.ne.s32.totalorder (!%p206_p3), %s856_s28, 0 }
  0x30   : > { %209 = sbr.rel (%p206_p3) target bundleno = 311 (0x137), region = 40  ;;  %s212_s26 = scalar_lea.sflag (!%p206_p3), [#allocation3], %s793_s23 }
  0x31   : > { %s508_s25 = smul.u32 (!%p206_p3), 20, %s793_s23 }
  0x33   : > { %s215_s7 = scalar_lea.vmem (!%p206_p3), [#allocation2], %s508_s25 }
  0x35   : > { %640 = dma.done.wait (%p861_p6), %s212_s26, 320  }
  0x36   : > { %642 = vsyncadd (%p861_p6), %s212_s26, 4294966976  ;;  %v667_v0 = vmov 0.0   ;;  %vm668_vm0 = vmmov 0   ;;  %v669_v1 = vmov 0   ;;  %vm274_vm1 = vcmask 1041408   ;;  %v563_v4 = vld [vmem:[%s215_s7 + $0x8] sm:$0xff]  }
  0x37   : > { %487 = vmatprep.subr.bf16.mxu0 %v667_v0  ;;  %497 = vmatprep.subr.bf16.mxu1 %v667_v0  ;;  %v562_v2 = vld [vmem:[%s215_s7 + $0x10] ss:$0 sps:$4 sm:$0x33]   ;;  %v319_v5 = vld [vmem:[%s852_s4] sm:$0xf]  ;;  %vm270_vm2 = vcmask 293888  }
  0x38   : > { %493 = vmatprep.mubr.msk.bf16.mxu0 %vm668_vm0, %v667_v0  ;;  %503 = vmatprep.mubr.msk.bf16.mxu1 %vm668_vm0, %v667_v0  ;;  %v276_v3 = vsel %vm274_vm1, %v562_v2, 0  ;;  %v249_v6 = vld [vmem:[%s851_s3] sm:$0xf]  ;;  %s468_s10 = sshll.u32 %s793_s23, 2  ;;  %s476_s13 = sshll.u32 %s722_s22, 6 }
  0x39   : > { %561 = vset.pattern.permute.xlu0 %v669_v1  ;;  %488 = vmatpush3.bf16.msra.mxu0 %v276_v3  ;;  %v564_v7 = vld [vmem:[%s215_s7] sm:$0xff]   ;;  %s241_s16 = scalar_lea.vmem [#allocation5], %s468_s10  ;;  %s391_s7 = scalar_lea.hbm %s853_s5, %s476_s13 }
  0x3a   : > { %498 = vmatpush3.bf16.msra.mxu1 %v276_v3  ;;  %489 = vmatprep.subr.bf16.mxu0 %v667_v0  ;;  %v248_v8 = vld [vmem:[%s849_s1] sm:$0x3]  ;;  %s393_s17 = sshll.u32 %s241_s16, 4  ;;  %s380_s11 = scalar_lea.sflag [#allocation4], %s793_s23  ;;  %s394_s17 = int_to_ptr.vmem [resolvable:$true] %s393_s17 }
  0x3b   : > { %499 = vmatprep.subr.bf16.mxu1 %v667_v0  ;;  %322 = vperm.xlu0 %561, %v319_v5   ;;  %v318_v9 = vld [vmem:[%s850_s2] sm:$0x3]  ;;  %s597_s12 = scalar_lea.vmem %s394_s17, 64  ;;  %p862_p11 = scmp.ne.s32.totalorder %s857_s29, 0 }
  0x3c   : > { %p598_p10 = scmp.ne.s32.totalorder %s394_s17, %s597_s12  ;;  %s670_s28 = smov [#allocation5]  }
  0x3d   : > { %490 = vmatpush3.bf16.msra.mxu0 %v563_v4  ;;  %s601_s14 = sshll.u32 %s670_s28, 4  ;;  %s602_s14 = int_to_ptr.vmem [resolvable:$false] %s601_s14 }
  0x3e   : > { %500 = vmatpush3.bf16.msra.mxu1 %v563_v4  ;;  %491 = vmatprep.subr.bf16.mxu0 %v667_v0  ;;  %p599_p12 = pnand %p598_p10, %p862_p11  ;;  %s603_s22 = scalar_lea.vmem %s602_s14, 128 }
  0x3f   : > { %501 = vmatprep.subr.bf16.mxu1 %v667_v0  ;;  %252 = vperm.xlu0 %561, %v249_v6   ;;  %p604_p5 = scmp.lt.s32.totalorder %s394_s17, %s602_s14  ;;  %p605_p7 = scmp.lt.s32.totalorder %s603_s22, %s597_s12 }
  0x40   : > { %p600_p4 = pneg %p599_p12 }
  0x41   : > { %492 = vmatpush3.bf16.msra.mxu0 %v564_v7  ;;  %p606_p8 = por %p605_p7, %p604_p5 }
  0x42   : > { %502 = vmatpush3.bf16.msra.mxu1 %v564_v7 }
  0x43   : > { %p607_p9 = pnand %p606_p8, %p600_p4 }
  0x44   : > { %494 = vmatmul.mubr.msk.bf16.vlgmr.msra.gmra.mxu0 %vm270_vm2, %v248_v8 }
  0x45   : > { %504 = vmatmul.mubr.msk.bf16.vlgmr.msra.gmra.mxu1 %vm270_vm2, %v318_v9 }
  0xb6   : > { %v323_v10 = vpop.permute.xlu0 %322 }
  0xba   : > { %v253_v23 = vpop.permute.xlu0 %252 }
 0x104   : > { %v312_v11 = vpop.f32.mrf.mxu0 }
 0x105   : > { %v362_v12 = vpop.f32.mrf.mxu1  ;;  %v313_v24 = vadd.f32 %v312_v11, %v253_v23 }
 0x106   : > { %v363_v13 = vadd.f32 %v362_v12, %v323_v10  ;;  %v495_v15 = vpop.f32.mrf.mxu0 }
 0x107   : > { %v505_v14 = vpop.f32.mrf.mxu1  ;;  %v369_v25 = vmul.f32 0.2, %v313_v24  ;;  %vm368_vm3 = vcmp.ge.f32.partialorder %v313_v24, 0.0 }
 0x108   : > { %v474_v16 = vmul.f32 -1.442695, %v363_v13  ;;  %v315_v18 = vpop.f32.mrf.mxu0 }
 0x109   : > { %v365_v17 = vpop.f32.mrf.mxu1  ;;  %v370_v27 = vsel %vm368_vm3, %v313_v24, %v369_v25 }
 0x10a   : > { %565 = vpow2.f32 %v474_v16  ;;  %v496_v20 = vpop.f32.mrf.mxu0 }
 0x10b   : > { %v506_v19 = vpop.f32.mrf.mxu1 }
 0x117   : > { %v566_v21 = vpop.eup %565 }
 0x118   : > { %v374_v22 = vadd.f32 1.0, %v566_v21 }
 0x11a   : > { %567 = vrcp.f32 %v374_v22 }
 0x127   : > { %v568_v26 = vpop.eup %567 }
 0x128   : > { %v377_v28 = vmul.f32 %v568_v26, %v370_v27 }
 0x12a   : > { %378 = vst [vmem:[%s241_s16] sm:$0xf] %v377_v28 }
 0x12b   : > { %610 = shalt.err (!%p607_p9)
}
 0x12c   : > { %s611_s15 = scalar_lea.hbm %s391_s7, 64  ;;  %s615_s8 = scalar_lea.hbm %s853_s5, 256 }
 0x12d   : > { %p612_p0 = scmp.ne.s32.totalorder %s391_s7, %s611_s15  ;;  %p616_p1 = scmp.lt.s32.totalorder %s391_s7, %s853_s5 }
 0x12e   : > { %p617_p3 = scmp.lt.s32.totalorder %s615_s8, %s611_s15 }
 0x12f   : > { %p613_p2 = pnand %p612_p0, %p862_p11 }
 0x130   : > { %p618_p6 = por %p617_p3, %p616_p1 }
 0x131   : > { %p614_p13 = pneg %p613_p2 }
 0x133   : > { %p619_p10 = pnand %p618_p6, %p614_p13 }
 0x135   : > { %622 = shalt.err (!%p619_p10)
}
 0x136   : > { %511 = dma.vmem_to_hbm [thread:$0]  (%p862_p11), %s394_s17, 64, %s391_s7, %s380_s11  }
 0x137 PF: > { %p522_p12 = scmp.ge.s32.totalorder %s661_s21, 2  ;;  %s405_s13 = sand.u32 1, %s649_s18  }
 0x138   : > { %p863_p4 = scmp.ne.s32.totalorder %s858_s30, 0  ;;  %s406_s16 = scalar_lea.sflag [#allocation4], %s405_s13 }
 0x13a   : > { %p518_p5 = pnand %p522_p12, %p863_p4 }
 0x13c   : > { %p519_p7 = pneg %p518_p5 }
 0x13e   : > { %644 = dma.done.wait (%p519_p7), %s406_s16, 64  }
 0x13f   : > { %646 = vsyncadd (%p519_p7), %s406_s16, 4294967232  ;;  %p18_p8 = scmp.ge.s32.totalorder %s726_s24, 6   ;;  %s864_s18 = smov %s653_s19 }
 0x140   : > { %s865_s19 = smov %s657_s20  ;;  %s866_s20 = smov %s738_s27 }
 0x141   : > { %s867_s21 = smov %s726_s24  ;;  %20 = sbr.rel (!%p18_p8) target bundleno = 5 (0x5), region = 85 }
 0x146   :  { %411 = vsyncpa [#allocation3], 1 }
 0x147   :  { %413 = vsyncpa [#allocation3 + $0x1], 1 }
 0x148   :  { %414 = vsyncpa [#allocation4], 1 }
 0x149   :  { %416 = vsyncpa [#allocation4 + $0x1], 1 }

</bundles_post_ra>
